<compile_context>
chip_gen: v5e
topology: v5e:2x2
jax: 0.10.0
libtpu: 0.0.40
codegen_flags: <defaults>
</compile_context>

<pallas_src>
import jax
import jax.numpy as jnp
from jax.experimental import pallas as pl
from jax.experimental.pallas import tpu as pltpu


def _copy_kernel(x_ref, o_ref):
    # Pure element-wise identity: copy the VMEM tile through.
    o_ref[...] = x_ref[...]


# ~2 MiB per block -> 4 x 2 MiB with double-buffered in+out = 8 MiB VMEM,
# comfortably inside every generation's scoped-VMEM default (v5e 16 MiB,
# v6e 32 MiB, v7x 32 MiB of 64 MiB physical).
_TARGET_BLOCK_BYTES = 2 * 1024 * 1024


def _pick_layout(n, itemsize):
    """Padding-free (rows, lane) factorization + block row count, or None."""
    # Lane (last) dim: widest multiple of 128 dividing n while keeping >= 8 rows
    # (full sublanes -> unmasked, wide vst / DMA descriptors).
    lane = 0
    for cand in (1024, 512, 256, 128):
        if n % cand == 0 and (n // cand) % 8 == 0:
            lane = cand
            break
    if lane == 0:
        for cand in (1024, 512, 256, 128):
            if n % cand == 0:
                lane = cand
                break
    if lane == 0:
        return None
    rows = n // lane

    # Minimum sublane count per dtype packing (f32: 8, bf16: 16, int8/fp8: 32).
    min_rows = 8 if itemsize >= 4 else (16 if itemsize == 2 else 32)
    max_rows = max(min_rows, _TARGET_BLOCK_BYTES // (lane * itemsize))

    if rows <= max_rows:
        # Single full-height block (full array dim is always a legal block dim).
        return rows, lane, rows

    # Largest divisor of rows that is a multiple of min_rows and <= max_rows,
    # so the grid tiles evenly with no masked boundary blocks.
    start = (max_rows // min_rows) * min_rows
    for cand in range(start, 0, -min_rows):
        if rows % cand == 0:
            return rows, lane, cand
    return None


@jax.jit
def identity_layer(x):
    """Identity forward pass (PyTorch IdentityLayer) via a Pallas TPU kernel."""
    n = x.size
    if n == 0:
        return x

    layout = _pick_layout(n, jnp.dtype(x.dtype).itemsize)
    if layout is None:
        # Ragged element count: the exact identity needs zero data movement,
        # so skip the kernel rather than pay pad/slice HBM passes.
        return x
    rows, lane, block_rows = layout

    # Metadata-only reshape of contiguous row-major data (no extra HBM pass).
    x2d = jnp.reshape(x, (rows, lane))

    out2d = pl.pallas_call(
        _copy_kernel,
        out_shape=jax.ShapeDtypeStruct((rows, lane), x.dtype),
        grid=(rows // block_rows,),
        in_specs=[pl.BlockSpec((block_rows, lane), lambda i: (i, 0))],
        out_specs=pl.BlockSpec((block_rows, lane), lambda i: (i, 0)),
        # Identity: write straight back into the input's HBM buffer; lets XLA
        # drop the output allocation / elide the copy when the input is dead.
        input_output_aliases={0: 0},
        cost_estimate=pl.CostEstimate(
            flops=0,
            transcendentals=0,
            bytes_accessed=2 * n * jnp.dtype(x.dtype).itemsize,
        ),
        compiler_params=pltpu.CompilerParams(
            # Parallel grid so v7x's two TensorCores both drive DMA.
            dimension_semantics=("parallel",),
        ),
    )(x2d)

    return jnp.reshape(out2d, x.shape)


if __name__ == "__main__":
    key = jax.random.PRNGKey(0)
    # Small NCHW input consistent with a CIFAR-style model: batch=2, C=4, 16x16.
    x = jax.random.normal(key, (2, 4, 16, 16), dtype=jnp.float32)

    y = identity_layer(x)
    y = jax.block_until_ready(y)

    assert y.shape == x.shape, (y.shape, x.shape)
    assert y.dtype == x.dtype, (y.dtype, x.dtype)
    assert bool(jnp.all(y == x)), "identity mismatch"

    print("KERNEL_OK")
</pallas_src>

<mosaic_0001>
module attributes {stable_mosaic.version = 11 : i64} {
  func.func @_copy_kernel(%arg0: i32, %arg1: memref<8x256xf32, #tpu.memory_space<vmem>>, %arg2: memref<8x256xf32, #tpu.memory_space<vmem>>) attributes {dimension_semantics = [#tpu.dimension_semantics<parallel>], iteration_bounds = array<i64: 1>, scalar_prefetch = 0 : i64, scratch_operands = 0 : i64, tpu.core_type = #tpu.core_type<tc>, window_params = [{transform_indices = @transform_0, window_bounds = array<i64: 8, 256>}, {transform_indices = @transform_1, window_bounds = array<i64: 8, 256>}]} {
    %c0 = arith.constant 0 : index
    %c0_0 = arith.constant 0 : index
    %0 = vector.load %arg1[%c0, %c0_0] : memref<8x256xf32, #tpu.memory_space<vmem>>, vector<8x256xf32>
    %c0_1 = arith.constant 0 : index
    %c0_2 = arith.constant 0 : index
    %1 = vector.load %arg2[%c0_1, %c0_2] : memref<8x256xf32, #tpu.memory_space<vmem>>, vector<8x256xf32>
    tpu.vector_store %arg2[%c0_1, %c0_2], %0 {strides = array<i32>} : memref<8x256xf32, #tpu.memory_space<vmem>>, vector<8x256xf32>,
    return
  }
  func.func @transform_0(%arg0: i32) -> (i32, i32) {
    %c0_i32 = arith.constant 0 : i32
    %c0_i32_0 = arith.constant 0 : i32
    return %arg0, %c0_i32 : i32, i32
  }
  func.func @transform_1(%arg0: i32) -> (i32, i32) {
    %c0_i32 = arith.constant 0 : i32
    %c0_i32_0 = arith.constant 0 : i32
    return %arg0, %c0_i32 : i32, i32
  }
}

</mosaic_0001>

<bundles_post_ra>
// kernel: identity_layer.1
= control target key start
LH: loop header
LB: loop body
LE: loop exit
PB: predicated region body
PF: predicated region fallthrough
CT: control target
= control target key end

     0   :  { %s38_s0 = inlined_call_operand.vmem [shape: f32[8,256], index: 0, kind: input, shape index: {}, may-alias: {0,1}]   ;;  %s39_s1 = inlined_call_operand.vmem [shape: f32[8,256], index: 1, kind: output, shape index: {}, may-alias: {0,1}]  }
   0x1   :  { %v8_v0 = vld [vmem:[%s38_s0] sm:$0xff]  ;;  %v9_v1 = vld [vmem:[%s38_s0 + $0x8] sm:$0xff] }
   0x2   :  { %10 = vst [vmem:[%s39_s1] sm:$0xff] %v8_v0 }
   0x3   :  { %11 = vst [vmem:[%s39_s1 + $0x8] sm:$0xff] %v9_v1 }

</bundles_post_ra>
